<compile_context>
chip_gen: v6e
topology: v6e:2x2x1
jax: 0.10.0
libtpu: 0.0.40
codegen_flags: <defaults>
</compile_context>

<pallas_src>
import functools

import jax
import jax.numpy as jnp
from jax import lax
from jax.experimental import pallas as pl
from jax.experimental.pallas import tpu as pltpu


def _mlp_sr_kernel(x_ref,
                   w1_ref, b1_ref,
                   w2_ref, b2_ref,
                   w3_ref, b3_ref,
                   w4_ref, b4_ref,
                   o_ref,
                   *, lane_dense_out):
    """Fused 4-layer MLP on one (tb, in_dim) batch tile.

    Weights/biases are grid-invariant VMEM-resident blocks.  Matmuls accumulate
    in f32 on the MXU; bias adds / ReLUs run in f32 on the VPU.
    """
    compute_dtype = w1_ref.dtype
    # Cast in-kernel (VPU) — avoids a separate wrapper-side HBM convert pass.
    x = x_ref[...].astype(compute_dtype)

    h = jnp.dot(x, w1_ref[...], preferred_element_type=jnp.float32) + b1_ref[...]
    h = jnp.maximum(h, 0.0)                      # ReLU (Dropout = identity in eval)

    h = jnp.dot(h.astype(compute_dtype), w2_ref[...],
                preferred_element_type=jnp.float32) + b2_ref[...]
    h = jnp.maximum(h, 0.0)

    h = jnp.dot(h.astype(compute_dtype), w3_ref[...],
                preferred_element_type=jnp.float32) + b3_ref[...]
    h = jnp.maximum(h, 0.0)

    if lane_dense_out:
        # out_dim == 1: w4 prepared as (1, hidden).  Contract hidden from both
        # operands so the result comes out as a lane-dense (1, tb) row block.
        out = lax.dot_general(
            w4_ref[...], h.astype(compute_dtype),
            dimension_numbers=(((1,), (1,)), ((), ())),
            preferred_element_type=jnp.float32)          # (1, tb)
        out = out + b4_ref[...]                          # b4 is (1, 1)
    else:
        out = jnp.dot(h.astype(compute_dtype), w4_ref[...],
                      preferred_element_type=jnp.float32) + b4_ref[...]

    o_ref[...] = out.astype(o_ref.dtype)


def prepare_params(params, *, use_bf16=True):
    """One-time parameter prep: cast matmul operands to bf16, biases to f32,
    pre-transpose the final weight when out_dim == 1.

    Call ONCE at parameter-load time (not per forward) so the per-call path
    contains only the single pallas_call.
    """
    w1, b1, w2, b2, w3, b3, w4, b4 = params
    cd = jnp.bfloat16 if use_bf16 else jnp.float32
    out_dim = w4.shape[1]
    lane_dense_out = (out_dim == 1)

    if lane_dense_out:
        w4p = jnp.asarray(w4, cd).T                              # (1, hidden)
        b4p = jnp.asarray(b4, jnp.float32).reshape(1, 1)
    else:
        w4p = jnp.asarray(w4, cd)                                # (hidden, out_dim)
        b4p = jnp.asarray(b4, jnp.float32).reshape(1, out_dim)

    prepped = (jnp.asarray(w1, cd), jnp.asarray(b1, jnp.float32).reshape(1, -1),
               jnp.asarray(w2, cd), jnp.asarray(b2, jnp.float32).reshape(1, -1),
               jnp.asarray(w3, cd), jnp.asarray(b3, jnp.float32).reshape(1, -1),
               w4p, b4p)
    return prepped, lane_dense_out


@functools.partial(jax.jit, static_argnames=("block_batch", "lane_dense_out"))
def mlp_sr_forward(x, prepped_params, *, block_batch=1024, lane_dense_out=True):
    """Run MLP_SR.forward (MLP branch) with a single Pallas call.

    x: (batch, in_dim) float32
    prepped_params: output of prepare_params() — wi in (fan_in, fan_out) layout
                    (transpose of torch nn.Linear.weight), bi as (1, fan_out);
                    w4/b4 pre-transposed when out_dim == 1.
    """
    w1, b1, w2, b2, w3, b3, w4, b4 = prepped_params
    batch, in_dim = x.shape
    out_dim = w4.shape[0] if lane_dense_out else w4.shape[1]

    # Batch tile: no wrapper-side pad; cdiv grid + Pallas block clipping handle the
    # partial last block.  Alignment: lane-dense output puts tb on the lane axis
    # (needs %128), otherwise tb is a sublane axis (needs %8) — or tb == batch.
    if batch <= block_batch:
        tb = batch
    else:
        align = 128 if lane_dense_out else 8
        tb = max(align, (block_batch // align) * align)
    num_blocks = pl.cdiv(batch, tb)
    # NOTE(v7x): keep num_blocks >= 2 (and even) via block_batch when batch is large
    # so the "parallel" batch axis actually splits across both TensorCores; on
    # v5e/v6e (single TC) fewest/biggest blocks is best.

    resident = lambda a: pl.BlockSpec(a.shape, lambda i: (0,) * a.ndim)
    kernel = functools.partial(_mlp_sr_kernel, lane_dense_out=lane_dense_out)

    if lane_dense_out:
        out_shape = jax.ShapeDtypeStruct((1, batch), jnp.float32)
        out_spec = pl.BlockSpec((1, tb), lambda i: (0, i))
    else:
        out_shape = jax.ShapeDtypeStruct((batch, out_dim), jnp.float32)
        out_spec = pl.BlockSpec((tb, out_dim), lambda i: (i, 0))

    out = pl.pallas_call(
        kernel,
        out_shape=out_shape,
        grid=(num_blocks,),
        in_specs=[
            pl.BlockSpec((tb, in_dim), lambda i: (i, 0)),   # x tile (f32, cast in-kernel)
            resident(w1), resident(b1),
            resident(w2), resident(b2),
            resident(w3), resident(b3),
            resident(w4), resident(b4),
        ],
        out_specs=out_spec,
        compiler_params=pltpu.CompilerParams(
            dimension_semantics=("parallel",),              # megacore shard on v7x
            vmem_limit_bytes=32 * 1024 * 1024,
        ),
    )(x, w1, b1, w2, b2, w3, b3, w4, b4)

    if lane_dense_out:
        # (1, batch) row-major is the same contiguous buffer as (batch, 1): free reshape.
        out = out.reshape(batch, 1)
    return out


def init_params(key, in_dim, hidden_dim, out_dim):
    """Deterministic PyTorch-style (uniform +-1/sqrt(fan_in)) initialization.

    Weights are produced directly in (fan_in, fan_out) layout.
    """
    dims = [(in_dim, hidden_dim),
            (hidden_dim, hidden_dim),
            (hidden_dim, hidden_dim),
            (hidden_dim, out_dim)]
    params = []
    for fan_in, fan_out in dims:
        key, kw, kb = jax.random.split(key, 3)
        bound = 1.0 / jnp.sqrt(jnp.float32(fan_in))
        w = jax.random.uniform(kw, (fan_in, fan_out), jnp.float32, -bound, bound)
        b = jax.random.uniform(kb, (1, fan_out), jnp.float32, -bound, bound)
        params += [w, b]
    return tuple(params)


def _reference_forward(x, params, *, use_bf16=True):
    """Plain-JAX reference matching the kernel's numerical path (bf16 operands, f32 acc)."""
    w1, b1, w2, b2, w3, b3, w4, b4 = params
    cd = jnp.bfloat16 if use_bf16 else jnp.float32

    def lin(h, w, b):
        return jnp.dot(h.astype(cd), w.astype(cd),
                       preferred_element_type=jnp.float32) + b.reshape(1, -1)

    h = jnp.maximum(lin(x, w1, b1), 0.0)
    h = jnp.maximum(lin(h, w2, b2), 0.0)
    h = jnp.maximum(lin(h, w3, b3), 0.0)
    return lin(h, w4, b4)


def _reference_forward_f32(x, params):
    """Exact f32 reference of the PyTorch module (semantics check)."""
    w1, b1, w2, b2, w3, b3, w4, b4 = params
    h = jnp.maximum(x @ w1 + b1, 0.0)
    h = jnp.maximum(h @ w2 + b2, 0.0)
    h = jnp.maximum(h @ w3 + b3, 0.0)
    return h @ w4 + b4


if __name__ == "__main__":
    # Shapes consistent with the docstring example: input_dim=5, hidden=64, output_dim=1.
    batch, in_dim, hidden_dim, out_dim = 512, 5, 64, 1
    block_batch = 256   # -> 2 even grid steps: exercises pipelining + v7x megacore

    key = jax.random.PRNGKey(0)
    key, kx = jax.random.split(key)
    x = jax.random.normal(kx, (batch, in_dim), jnp.float32)

    raw_params = init_params(key, in_dim, hidden_dim, out_dim)
    prepped, lane_dense_out = prepare_params(raw_params, use_bf16=True)

    out = mlp_sr_forward(x, prepped, block_batch=block_batch,
                         lane_dense_out=lane_dense_out)
    out = jax.block_until_ready(out)
    assert out.shape == (batch, out_dim)

    # Tight check vs. a reference with the same bf16-operand / f32-accumulate path.
    ref_same = _reference_forward(x, raw_params, use_bf16=True)
    assert jnp.allclose(out, ref_same, atol=2e-3, rtol=2e-3), \
        float(jnp.max(jnp.abs(out - ref_same)))

    # Loose check vs. the exact f32 PyTorch-equivalent math (bf16 rounding error).
    ref_f32 = _reference_forward_f32(x, raw_params)
    assert jnp.allclose(out, ref_f32, atol=5e-2, rtol=5e-2), \
        float(jnp.max(jnp.abs(out - ref_f32)))

    print("KERNEL_OK")
</pallas_src>

<mosaic_0001>
module attributes {stable_mosaic.version = 11 : i64} {
  func.func @_mlp_sr_kernel(%arg0: i32, %arg1: memref<256x5xf32, #tpu.memory_space<vmem>>, %arg2: memref<5x64xbf16, #tpu.memory_space<vmem>>, %arg3: memref<1x64xf32, #tpu.memory_space<vmem>>, %arg4: memref<64x64xbf16, #tpu.memory_space<vmem>>, %arg5: memref<1x64xf32, #tpu.memory_space<vmem>>, %arg6: memref<64x64xbf16, #tpu.memory_space<vmem>>, %arg7: memref<1x64xf32, #tpu.memory_space<vmem>>, %arg8: memref<1x64xbf16, #tpu.memory_space<vmem>>, %arg9: memref<1x1xf32, #tpu.memory_space<vmem>>, %arg10: memref<1x256xf32, #tpu.memory_space<vmem>>) attributes {dimension_semantics = [#tpu.dimension_semantics<parallel>], iteration_bounds = array<i64: 2>, scalar_prefetch = 0 : i64, scratch_operands = 0 : i64, tpu.core_type = #tpu.core_type<tc>, window_params = [{transform_indices = @transform_0, window_bounds = array<i64: 256, 5>}, {pipeline_mode = #tpu.pipeline_mode<synchronous>, transform_indices = @transform_1, window_bounds = array<i64: 5, 64>}, {pipeline_mode = #tpu.pipeline_mode<synchronous>, transform_indices = @transform_2, window_bounds = array<i64: 1, 64>}, {pipeline_mode = #tpu.pipeline_mode<synchronous>, transform_indices = @transform_3, window_bounds = array<i64: 64, 64>}, {pipeline_mode = #tpu.pipeline_mode<synchronous>, transform_indices = @transform_4, window_bounds = array<i64: 1, 64>}, {pipeline_mode = #tpu.pipeline_mode<synchronous>, transform_indices = @transform_5, window_bounds = array<i64: 64, 64>}, {pipeline_mode = #tpu.pipeline_mode<synchronous>, transform_indices = @transform_6, window_bounds = array<i64: 1, 64>}, {pipeline_mode = #tpu.pipeline_mode<synchronous>, transform_indices = @transform_7, window_bounds = array<i64: 1, 64>}, {pipeline_mode = #tpu.pipeline_mode<synchronous>, transform_indices = @transform_8, window_bounds = array<i64: 1, 1>}, {transform_indices = @transform_9, window_bounds = array<i64: 1, 256>}]} {
    %c0 = arith.constant 0 : index
    %c0_0 = arith.constant 0 : index
    %0 = vector.load %arg1[%c0, %c0_0] : memref<256x5xf32, #tpu.memory_space<vmem>>, vector<256x5xf32>
    %1 = arith.truncf %0 : vector<256x5xf32> to vector<256x5xbf16>
    %c0_1 = arith.constant 0 : index
    %c0_2 = arith.constant 0 : index
    %2 = vector.load %arg2[%c0_1, %c0_2] : memref<5x64xbf16, #tpu.memory_space<vmem>>, vector<5x64xbf16>
    %cst = arith.constant dense<0.000000e+00> : vector<256x64xf32>
    %3 = tpu.matmul %1, %2, %cst {dimension_numbers = #tpu.dot_dimension_numbers<[1], [0], [0], [1], [0, 0, 1, 1], [], []>} : vector<256x5xbf16>, vector<5x64xbf16>, vector<256x64xf32> -> vector<256x64xf32>
    %c0_3 = arith.constant 0 : index
    %c0_4 = arith.constant 0 : index
    %4 = vector.load %arg3[%c0_3, %c0_4] : memref<1x64xf32, #tpu.memory_space<vmem>>, vector<1x64xf32>
    %5 = vector.broadcast %4 : vector<1x64xf32> to vector<256x64xf32>
    %6 = arith.addf %3, %5 : vector<256x64xf32>
    %cst_5 = arith.constant 0.000000e+00 : f32
    %7 = vector.broadcast %cst_5 : f32 to vector<256x64xf32>
    %8 = arith.maximumf %6, %7 : vector<256x64xf32>
    %9 = arith.truncf %8 : vector<256x64xf32> to vector<256x64xbf16>
    %c0_6 = arith.constant 0 : index
    %c0_7 = arith.constant 0 : index
    %10 = vector.load %arg4[%c0_6, %c0_7] : memref<64x64xbf16, #tpu.memory_space<vmem>>, vector<64x64xbf16>
    %cst_8 = arith.constant dense<0.000000e+00> : vector<256x64xf32>
    %11 = tpu.matmul %9, %10, %cst_8 {dimension_numbers = #tpu.dot_dimension_numbers<[1], [0], [0], [1], [0, 0, 1, 1], [], []>} : vector<256x64xbf16>, vector<64x64xbf16>, vector<256x64xf32> -> vector<256x64xf32>
    %c0_9 = arith.constant 0 : index
    %c0_10 = arith.constant 0 : index
    %12 = vector.load %arg5[%c0_9, %c0_10] : memref<1x64xf32, #tpu.memory_space<vmem>>, vector<1x64xf32>
    %13 = vector.broadcast %12 : vector<1x64xf32> to vector<256x64xf32>
    %14 = arith.addf %11, %13 : vector<256x64xf32>
    %cst_11 = arith.constant 0.000000e+00 : f32
    %15 = vector.broadcast %cst_11 : f32 to vector<256x64xf32>
    %16 = arith.maximumf %14, %15 : vector<256x64xf32>
    %17 = arith.truncf %16 : vector<256x64xf32> to vector<256x64xbf16>
    %c0_12 = arith.constant 0 : index
    %c0_13 = arith.constant 0 : index
    %18 = vector.load %arg6[%c0_12, %c0_13] : memref<64x64xbf16, #tpu.memory_space<vmem>>, vector<64x64xbf16>
    %cst_14 = arith.constant dense<0.000000e+00> : vector<256x64xf32>
    %19 = tpu.matmul %17, %18, %cst_14 {dimension_numbers = #tpu.dot_dimension_numbers<[1], [0], [0], [1], [0, 0, 1, 1], [], []>} : vector<256x64xbf16>, vector<64x64xbf16>, vector<256x64xf32> -> vector<256x64xf32>
    %c0_15 = arith.constant 0 : index
    %c0_16 = arith.constant 0 : index
    %20 = vector.load %arg7[%c0_15, %c0_16] : memref<1x64xf32, #tpu.memory_space<vmem>>, vector<1x64xf32>
    %21 = vector.broadcast %20 : vector<1x64xf32> to vector<256x64xf32>
    %22 = arith.addf %19, %21 : vector<256x64xf32>
    %cst_17 = arith.constant 0.000000e+00 : f32
    %23 = vector.broadcast %cst_17 : f32 to vector<256x64xf32>
    %24 = arith.maximumf %22, %23 : vector<256x64xf32>
    %c0_18 = arith.constant 0 : index
    %c0_19 = arith.constant 0 : index
    %25 = vector.load %arg8[%c0_18, %c0_19] : memref<1x64xbf16, #tpu.memory_space<vmem>>, vector<1x64xbf16>
    %26 = arith.truncf %24 : vector<256x64xf32> to vector<256x64xbf16>
    %cst_20 = arith.constant dense<0.000000e+00> : vector<1x256xf32>
    %27 = tpu.matmul %25, %26, %cst_20 {dimension_numbers = #tpu.dot_dimension_numbers<[1], [1], [0], [0], [0, 0, 1, 0], [], []>} : vector<1x64xbf16>, vector<256x64xbf16>, vector<1x256xf32> -> vector<1x256xf32>
    %c0_21 = arith.constant 0 : index
    %c0_22 = arith.constant 0 : index
    %28 = vector.load %arg9[%c0_21, %c0_22] : memref<1x1xf32, #tpu.memory_space<vmem>>, vector<1x1xf32>
    %29 = vector.broadcast %28 : vector<1x1xf32> to vector<1x256xf32>
    %30 = arith.addf %27, %29 : vector<1x256xf32>
    %c0_23 = arith.constant 0 : index
    %c0_24 = arith.constant 0 : index
    %31 = vector.load %arg10[%c0_23, %c0_24] : memref<1x256xf32, #tpu.memory_space<vmem>>, vector<1x256xf32>
    tpu.vector_store %arg10[%c0_23, %c0_24], %30 {strides = array<i32>} : memref<1x256xf32, #tpu.memory_space<vmem>>, vector<1x256xf32>,
    return
  }
  func.func @transform_0(%arg0: i32) -> (i32, i32) {
    %c0_i32 = arith.constant 0 : i32
    %c0_i32_0 = arith.constant 0 : i32
    return %arg0, %c0_i32 : i32, i32
  }
  func.func @transform_1(%arg0: i32) -> (i32, i32) {
    %c0_i32 = arith.constant 0 : i32
    %c0_i32_0 = arith.constant 0 : i32
    %c0_i32_1 = arith.constant 0 : i32
    return %c0_i32, %c0_i32_0 : i32, i32
  }
  func.func @transform_2(%arg0: i32) -> (i32, i32) {
    %c0_i32 = arith.constant 0 : i32
    %c0_i32_0 = arith.constant 0 : i32
    %c0_i32_1 = arith.constant 0 : i32
    return %c0_i32, %c0_i32_0 : i32, i32
  }
  func.func @transform_3(%arg0: i32) -> (i32, i32) {
    %c0_i32 = arith.constant 0 : i32
    %c0_i32_0 = arith.constant 0 : i32
    %c0_i32_1 = arith.constant 0 : i32
    return %c0_i32, %c0_i32_0 : i32, i32
  }
  func.func @transform_4(%arg0: i32) -> (i32, i32) {
    %c0_i32 = arith.constant 0 : i32
    %c0_i32_0 = arith.constant 0 : i32
    %c0_i32_1 = arith.constant 0 : i32
    return %c0_i32, %c0_i32_0 : i32, i32
  }
  func.func @transform_5(%arg0: i32) -> (i32, i32) {
    %c0_i32 = arith.constant 0 : i32
    %c0_i32_0 = arith.constant 0 : i32
    %c0_i32_1 = arith.constant 0 : i32
    return %c0_i32, %c0_i32_0 : i32, i32
  }
  func.func @transform_6(%arg0: i32) -> (i32, i32) {
    %c0_i32 = arith.constant 0 : i32
    %c0_i32_0 = arith.constant 0 : i32
    %c0_i32_1 = arith.constant 0 : i32
    return %c0_i32, %c0_i32_0 : i32, i32
  }
  func.func @transform_7(%arg0: i32) -> (i32, i32) {
    %c0_i32 = arith.constant 0 : i32
    %c0_i32_0 = arith.constant 0 : i32
    %c0_i32_1 = arith.constant 0 : i32
    return %c0_i32, %c0_i32_0 : i32, i32
  }
  func.func @transform_8(%arg0: i32) -> (i32, i32) {
    %c0_i32 = arith.constant 0 : i32
    %c0_i32_0 = arith.constant 0 : i32
    %c0_i32_1 = arith.constant 0 : i32
    return %c0_i32, %c0_i32_0 : i32, i32
  }
  func.func @transform_9(%arg0: i32) -> (i32, i32) {
    %c0_i32 = arith.constant 0 : i32
    %c0_i32_0 = arith.constant 0 : i32
    return %c0_i32, %arg0 : i32, i32
  }
}

</mosaic_0001>

<bundles_post_ra>
// kernel: mlp_sr_forward.1
= control target key start
LH: loop header
LB: loop body
LE: loop exit
PB: predicated region body
PF: predicated region fallthrough
CT: control target
= control target key end

     0   :  { %s2269_s0 = inlined_call_operand.vmem [shape: f32[512,5], index: 0, kind: input, shape index: {}]   ;;  %s2270_s1 = inlined_call_operand.vmem [shape: bf16[5,64], index: 1, kind: input, shape index: {}]   ;;  %s2271_s2 = inlined_call_operand.vmem [shape: f32[1,64], index: 2, kind: input, shape index: {}]   ;;  %s2272_s3 = inlined_call_operand.vmem [shape: bf16[64,64], index: 3, kind: input, shape index: {}]   ;;  %s2273_s4 = inlined_call_operand.vmem [shape: f32[1,64], index: 4, kind: input, shape index: {}]   ;;  %s2274_s5 = inlined_call_operand.vmem [shape: bf16[64,64], index: 5, kind: input, shape index: {}]   ;;  %s2275_s6 = inlined_call_operand.vmem [shape: f32[1,64], index: 6, kind: input, shape index: {}]   ;;  %s2276_s7 = inlined_call_operand.vmem [shape: bf16[1,64], index: 7, kind: input, shape index: {}]   ;;  %s2277_s8 = inlined_call_operand.<no memory space> [shape: f32[1,1], index: 8, kind: input, shape index: {}]   ;;  %s2278_s9 = inlined_call_operand.hbm [shape: f32[1,512], index: 9, kind: output, shape index: {}]  }
   0x1   :  { %v14_v0 = vstv %s2277_s8 }
   0x2   :  { %15 = vst [vmem:[#allocation2] sm:$0x1] %v14_v0 }
   0x3   :  { %16 = vsyncpa [#allocation4], 0 }
   0x4   :  { %18 = vsyncpa [#allocation4 + $0x1], 0  ;;  %s1893_s11 = smov 0   ;;  %s1895_s12 = smov 0  }
   0x5   :  { %s1897_s13 = smov 0   ;;  %s1899_s14 = smov 0  }
   0x6 LB: > { %s1450_s8 = sadd.s32 4294967295, %s1834_s14   ;;  %s1451_s15 = sadd.s32 4294967294, %s1834_s14   ;;  %s1834_s14 = sphi %s1899_s14, %s2284_s14   ;;  %s1830_s13 = sphi %s1897_s13, %s2283_s13   ;;  %s1826_s12 = sphi %s1895_s12, %s2282_s12   ;;  %s1822_s11 = sphi %s1893_s11, %s2281_s11  }
   0x7   : > { %s1916_s16 = sadd.s32 1, %s1834_s14   ;;  %s225_s17 = sadd.s32 1, %s1830_s13 }
   0x8   : > { %s222_s18 = ssub.s32 %s1834_s14, %s1916_s16  ;;  %p235_p0 = scmp.ne.s32.totalorder %s1830_s13, %s1826_s12 }
   0x9   : > { %p223_p1 = scmp.eq.s32.totalorder %s222_s18, 0  ;;  %p236_p2 = scmp.eq.s32.totalorder %s1450_s8, 1 }
   0xa   : > { %p241_p3 = scmp.ne.s32.totalorder %s1826_s12, %s1822_s11  ;;  %p242_p4 = scmp.eq.s32.totalorder %s1451_s15, 1 }
   0xb   : > { %s1926_s19 = scalar_select %p223_p1, %s1830_s13, %s225_s17  }
   0xc   : > { %p1928_p5 = por %p236_p2, %p235_p0  ;;  %p1932_p6 = por %p242_p4, %p241_p3 }
   0xd   : > { %p1454_p7 = scmp.ge.s32.totalorder %s1834_s14, 1  ;;  %p293_p8 = scmp.lt.s32.totalorder %s1834_s14, 3 }
   0xf   : > { %p294_p9 = pnand %p1454_p7, %p293_p8 }
  0x10   : > { %s1941_s24 = sshll.u32 (!%p294_p9), %s1450_s8, 5  ;;  %s1839_s23 = smov (!%p294_p9), [#allocation3]  }
  0x11   : > { %297 = sbr.rel (%p294_p9) target bundleno = 982 (0x3d6), region = 56  ;;  %p330_p10 = scmp.lt.s32.totalorder (!%p294_p9), %s1941_s24, 63 }
  0x12   : > { %s1390_s17 = scalar_lea.hbm (!%p294_p9), %s2278_s9, %s1941_s24 }
  0x16   : > { %v385_v1 = vld [vmem:[%s2270_s1] sm:$0x7]  ;;  %vm442_vm0 = vcmask 1041408   ;;  %vm443_vm1 = vcmask 1042432   ;;  %v1836_v2 = vmov 65535   ;;  %s331_s25 = scalar_select %p330_p10, %s1941_s24, 63 }
  0x17   : > { %v444_v3 = vsel %vm442_vm0, 4294967295, %v1836_v2  ;;  %v1766_v6 = vld [vmem:[%s2272_s3 + $0x18] sm:$0xff]   ;;  %vm393_vm2 = vcmask 39936   ;;  %v1767_v31 = vld [vmem:[%s2272_s3 + $0x10] sm:$0xff]   ;;  %v1768_v56 = vld [vmem:[%s2272_s3 + $0x8] sm:$0xff]   ;;  %vm697_vm3 = vcmask 523264  }
  0x18   : > { %v445_v4 = vsel %vm443_vm1, %v444_v3, 0  ;;  %s1457_s28 = sshll.u32 %s331_s25, 3  ;;  %v1769_v57 = vld [vmem:[%s2272_s3] sm:$0xff]   ;;  %v1770_v58 = vld [vmem:[%s2274_s5 + $0x18] sm:$0xff]   ;;  %v1771_v59 = vld [vmem:[%s2274_s5 + $0x10] sm:$0xff]   ;;  %s1778_s25 = sshll.u32 %s1839_s23, 4  ;;  %s1779_s25 = int_to_ptr.vmem [resolvable:$false] %s1778_s25 }
  0x19   : > { %v447_v5 = vand.u32 %v445_v4, %v385_v1  ;;  %s1951_s10 = scalar_lea.vmem %s2269_s0, %s1457_s28  ;;  %v1772_v60 = vld [vmem:[%s2274_s5 + $0x8] sm:$0xff]   ;;  %v2022_v63 = vld [vmem:[%s2271_s2] ss:$0 sm:$0xff]  ;;  %s326_s28 = sand.u32 1, %s1826_s12  }
  0x1a   : > { %v337_v7 = vld [vmem:[%s1951_s10] sm:$0xff]  ;;  %v338_v8 = vld [vmem:[%s1951_s10 + $0x8] sm:$0xff]  ;;  %v339_v9 = vld [vmem:[%s1951_s10 + $0x10] sm:$0xff]  ;;  %s1455_s29 = sshll.u32 %s326_s28, 1  ;;  %s1378_s18 = scalar_lea.sflag [#allocation4], %s326_s28 }
  0x1b   : > { %1599 = vmatprep.subr.bf16.mxu0 %v447_v5  ;;  %1713 = vmatprep.subr.bf16.mxu1 %v447_v5  ;;  %v369_v10 = vpack.c.bf16 %v338_v8, %v337_v7  ;;  %v340_v11 = vld [vmem:[%s1951_s10 + $0x18] sm:$0xff]  ;;  %v341_v12 = vld [vmem:[%s1951_s10 + $0x20] sm:$0xff]  ;;  %v342_v13 = vld [vmem:[%s1951_s10 + $0x28] sm:$0xff]  ;;  %s328_s30 = scalar_lea.vmem [#allocation3], %s1455_s29  ;;  %s1780_s26 = scalar_lea.vmem %s1779_s25, 64 }
  0x1c   : > { %1600 = vmatpush3.bf16.msra.mxu0 %v447_v5  ;;  %1714 = vmatpush3.bf16.msra.mxu1 %v447_v5  ;;  %v370_v14 = vpack.c.bf16 %v340_v11, %v339_v9  ;;  %v371_v15 = vpack.c.bf16 %v342_v13, %v341_v12  ;;  %v343_v16 = vld [vmem:[%s1951_s10 + $0x30] sm:$0xff]  ;;  %v344_v17 = vld [vmem:[%s1951_s10 + $0x38] sm:$0xff]  ;;  %v345_v18 = vld [vmem:[%s1951_s10 + $0x40] sm:$0xff] }
  0x1d   : > { %1633 = vmatprep.subr.bf16.mxu1 %v1766_v6  ;;  %1601 = vmatprep.mubr.msk.bf16.mxu0 %vm393_vm2, %v369_v10  ;;  %v346_v19 = vld [vmem:[%s1951_s10 + $0x48] sm:$0xff]  ;;  %v357_v20 = vld [vmem:[%s1951_s10 + $0xa0] sm:$0xff]  ;;  %v359_v22 = vld [vmem:[%s1951_s10 + $0xb0] sm:$0xff]  ;;  %v372_v24 = vpack.c.bf16 %v344_v17, %v343_v16 }
  0x1e   : > { %v358_v21 = vld [vmem:[%s1951_s10 + $0xa8] sm:$0xff]  ;;  %v360_v23 = vld [vmem:[%s1951_s10 + $0xb8] sm:$0xff]  ;;  %v361_v27 = vld [vmem:[%s1951_s10 + $0xc0] sm:$0xff]  ;;  %v373_v29 = vpack.c.bf16 %v346_v19, %v345_v18  ;;  %1673 = vmatprep.subr.bf16.mxu0 %v1770_v58 }
  0x1f   : > { %1602 = vmatmul.mubr.msk.bf16.vlgmr.msra.gmra.mxu0 %vm393_vm2, %v370_v14  ;;  %v379_v25 = vpack.c.bf16 %v358_v21, %v357_v20  ;;  %v380_v26 = vpack.c.bf16 %v360_v23, %v359_v22  ;;  %v362_v28 = vld [vmem:[%s1951_s10 + $0xc8] sm:$0xff]  ;;  %v347_v32 = vld [vmem:[%s1951_s10 + $0x50] sm:$0xff]  ;;  %v364_v34 = vld [vmem:[%s1951_s10 + $0xd8] sm:$0xff] }
  0x20   : > { %1605 = vmatprep.mubr.msk.bf16.mxu0 %vm393_vm2, %v371_v15  ;;  %v381_v30 = vpack.c.bf16 %v362_v28, %v361_v27  ;;  %v363_v33 = vld [vmem:[%s1951_s10 + $0xd0] sm:$0xff]  ;;  %v348_v35 = vld [vmem:[%s1951_s10 + $0x58] sm:$0xff]  ;;  %v365_v36 = vld [vmem:[%s1951_s10 + $0xe0] sm:$0xff]  ;;  %1674 = vmatpush3.bf16.msra.mxu0 %v1770_v58 }
  0x21   : > { %1621 = vmatprep.mubr.msk.bf16.mxu1 %vm393_vm2, %v379_v25  ;;  %v366_v37 = vld [vmem:[%s1951_s10 + $0xe8] sm:$0xff]  ;;  %v349_v38 = vld [vmem:[%s1951_s10 + $0x60] sm:$0xff]  ;;  %v382_v40 = vpack.c.bf16 %v364_v34, %v363_v33  ;;  %v374_v41 = vpack.c.bf16 %v348_v35, %v347_v32  ;;  %v367_v44 = vld [vmem:[%s1951_s10 + $0xf0] sm:$0xff]  ;;  %1675 = vmatprep.subr.bf16.mxu0 %v1771_v59 }
  0x22   : > { %1622 = vmatmul.mubr.msk.bf16.vlgmr.msra.gmra.mxu1 %vm393_vm2, %v380_v26  ;;  %v350_v39 = vld [vmem:[%s1951_s10 + $0x68] sm:$0xff]  ;;  %v383_v42 = vpack.c.bf16 %v366_v37, %v365_v36  ;;  %v368_v45 = vld [vmem:[%s1951_s10 + $0xf8] sm:$0xff]  ;;  %v351_v46 = vld [vmem:[%s1951_s10 + $0x70] sm:$0xff] }
  0x23   : > { %1625 = vmatprep.mubr.msk.bf16.mxu1 %vm393_vm2, %v381_v30  ;;  %1634 = vmatpush3.bf16.msra.mxu1 %v1766_v6  ;;  %v375_v43 = vpack.c.bf16 %v350_v39, %v349_v38  ;;  %v352_v47 = vld [vmem:[%s1951_s10 + $0x78] sm:$0xff]  ;;  %v353_v48 = vld [vmem:[%s1951_s10 + $0x80] sm:$0xff]  ;;  %v354_v49 = vld [vmem:[%s1951_s10 + $0x88] sm:$0xff]  ;;  %v384_v50 = vpack.c.bf16 %v368_v45, %v367_v44 }
  0x24   : > { %1635 = vmatprep.subr.bf16.mxu1 %v1767_v31  ;;  %v376_v51 = vpack.c.bf16 %v352_v47, %v351_v46  ;;  %v377_v52 = vpack.c.bf16 %v354_v49, %v353_v48  ;;  %v355_v53 = vld [vmem:[%s1951_s10 + $0x90] sm:$0xff]  ;;  %v356_v54 = vld [vmem:[%s1951_s10 + $0x98] sm:$0xff]  ;;  %1676 = vmatpush3.bf16.msra.mxu0 %v1771_v59  ;;  %s1392_s10 = sshll.u32 %s328_s30, 4  ;;  %s1393_s10 = int_to_ptr.vmem [resolvable:$true] %s1392_s10 }
  0x25   : > { %v378_v55 = vpack.c.bf16 %v356_v54, %v355_v53  ;;  %1677 = vmatprep.subr.bf16.mxu0 %v1772_v60  ;;  %s1774_s22 = scalar_lea.vmem %s1393_s10, 32  ;;  %p1781_p0 = scmp.lt.s32.totalorder %s1393_s10, %s1779_s25 }
  0x26   : > { %p1775_p11 = scmp.ne.s32.totalorder %s1393_s10, %s1774_s22  ;;  %p1782_p1 = scmp.lt.s32.totalorder %s1780_s26, %s1774_s22 }
  0x27   : > { %1606 = vmatmul.mubr.msk.bf16.gmra.mxu0 %vm393_vm2, %v372_v24  ;;  %1636 = vmatpush3.bf16.msra.mxu1 %v1767_v31 }
  0x28   : > { %1609 = vmatprep.mubr.msk.bf16.mxu0 %vm393_vm2, %v373_v29  ;;  %1637 = vmatprep.subr.bf16.mxu1 %v1768_v56  ;;  %p1776_p12 = pnand %p1775_p11, %p1928_p5  ;;  %p1783_p2 = por %p1782_p1, %p1781_p0 }
  0x29   : > { %1678 = vmatpush3.bf16.msra.mxu0 %v1772_v60 }
  0x2a   : > { %1626 = vmatmul.mubr.msk.bf16.gmra.mxu1 %vm393_vm2, %v382_v40  ;;  %p1777_p13 = pneg %p1776_p12 }
  0x2b   : > { %1629 = vmatprep.mubr.msk.bf16.mxu1 %vm393_vm2, %v383_v42  ;;  %1638 = vmatpush3.bf16.msra.mxu1 %v1768_v56 }
  0x2c   : > { %1639 = vmatprep.subr.bf16.mxu1 %v1769_v57  ;;  %p1784_p3 = pnand %p1783_p2, %p1777_p13 }
  0x2f   : > { %1610 = vmatmul.mubr.msk.bf16.gmra.mxu0 %vm393_vm2, %v374_v41  ;;  %1640 = vmatpush3.bf16.msra.mxu1 %v1769_v57 }
  0x30   : > { %1613 = vmatprep.mubr.msk.bf16.mxu0 %vm393_vm2, %v375_v43 }
  0x32   : > { %1630 = vmatmul.mubr.msk.bf16.gmra.mxu1 %vm393_vm2, %v384_v50 }
  0x37   : > { %1614 = vmatmul.mubr.msk.bf16.gmra.mxu0 %vm393_vm2, %v376_v51 }
  0x38   : > { %1617 = vmatprep.mubr.msk.bf16.mxu0 %vm393_vm2, %v377_v52 }
  0x3f   : > { %1618 = vmatmul.mubr.msk.bf16.gmra.mxu0 %vm393_vm2, %v378_v55 }
  0xdf   : > { %v1603_v61 = vpop.f32.mrf.mxu0 }
  0xe0   : > { %v492_v3 = vadd.f32 %v1603_v61, %v2022_v63 }
  0xe1   : > { %v483_v62 = vpop.f32.mrf.mxu0 }
  0xe2   : > { %v484_v1 = vadd.f32 %v2022_v63, %v483_v62  ;;  %v2028_v6 = vpop.f32.mrf.mxu1  ;;  %v612_v12 = vmax.f32 %v492_v3, 0.0 }
  0xe3   : > { %v1604_v0 = vpop.f32.mrf.mxu0 }
  0xe4   : > { %v495_v2 = vadd.f32 %v1604_v0, %v2022_v63  ;;  %v610_v9 = vmax.f32 %v484_v1, 0.0  ;;  %v563_v11 = vpop.f32.mrf.mxu1 }
  0xe5   : > { %v486_v4 = vpop.f32.mrf.mxu0  ;;  %v564_v0 = vadd.f32 %v2022_v63, %v563_v11 }
  0xe6   : > { %v487_v5 = vadd.f32 %v2022_v63, %v486_v4  ;;  %v613_v7 = vmax.f32 %v495_v2, 0.0  ;;  %v2030_v17 = vpop.f32.mrf.mxu1 }
  0xe7   : > { %v1607_v8 = vpop.f32.mrf.mxu0 }
  0xe8   : > { %v611_v10 = vmax.f32 %v487_v5, 0.0  ;;  %v643_v15 = vpack.c.bf16 %v613_v7, %v612_v12  ;;  %v508_v20 = vadd.f32 %v1607_v8, %v2022_v63  ;;  %v566_v25 = vpop.f32.mrf.mxu1 }
  0xe9   : > { %v499_v13 = vpop.f32.mrf.mxu0  ;;  %v567_v1 = vadd.f32 %v2022_v63, %v566_v25  ;;  %v575_v25 = vadd.f32 %v2030_v17, %v2022_v63 }
  0xea   : > { %v642_v14 = vpack.c.bf16 %v611_v10, %v610_v9  ;;  %v500_v18 = vadd.f32 %v2022_v63, %v499_v13  ;;  %v616_v28 = vmax.f32 %v508_v20, 0.0  ;;  %v2038_v33 = vpop.f32.mrf.mxu1  ;;  %v630_v10 = vmax.f32 %v564_v0, 0.0 }
  0xeb   : > { %v1608_v16 = vpop.f32.mrf.mxu0  ;;  %v631_v11 = vmax.f32 %v567_v1, 0.0  ;;  %v588_v17 = vadd.f32 %v2038_v33, %v2022_v63 }
  0xec   : > { %v511_v19 = vadd.f32 %v1608_v16, %v2022_v63  ;;  %1641 = vmatprep.mubr.msk.bf16.mxu1 %vm697_vm3, %v642_v14  ;;  %v614_v26 = vmax.f32 %v500_v18, 0.0  ;;  %v579_v41 = vpop.f32.mrf.mxu1 }
  0xed   : > { %v502_v21 = vpop.f32.mrf.mxu0  ;;  %1642 = vmatmul.mubr.msk.bf16.vlgmr.msra.gmra.mxu1 %vm697_vm3, %v643_v15  ;;  %v652_v20 = vpack.c.bf16 %v631_v11, %v630_v10 }
  0xee   : > { %v503_v22 = vadd.f32 %v2022_v63, %v502_v21  ;;  %v617_v23 = vmax.f32 %v511_v19, 0.0  ;;  %v1628_v49 = vpop.f32.mrf.mxu1  ;;  %v580_v21 = vadd.f32 %v2022_v63, %v579_v41 }
  0xef   : > { %v1611_v24 = vpop.f32.mrf.mxu0 }
  0xf0   : > { %v615_v27 = vmax.f32 %v503_v22, 0.0  ;;  %v645_v31 = vpack.c.bf16 %v617_v23, %v616_v28  ;;  %v524_v36 = vadd.f32 %v1611_v24, %v2022_v63  ;;  %v582_v57 = vpop.f32.mrf.mxu1  ;;  %v572_v23 = vadd.f32 %v2028_v6, %v2022_v63 }
  0xf1   : > { %v515_v29 = vpop.f32.mrf.mxu0  ;;  %v583_v22 = vadd.f32 %v2022_v63, %v582_v57 }
  0xf2   : > { %v644_v30 = vpack.c.bf16 %v615_v27, %v614_v26  ;;  %v516_v34 = vadd.f32 %v2022_v63, %v515_v29  ;;  %v620_v44 = vmax.f32 %v524_v36, 0.0  ;;  %v1631_v4 = vpop.f32.mrf.mxu1  ;;  %v634_v27 = vmax.f32 %v580_v21, 0.0 }
  0xf3   : > { %v1612_v32 = vpop.f32.mrf.mxu0  ;;  %v635_v28 = vmax.f32 %v583_v22, 0.0  ;;  %v632_v29 = vmax.f32 %v572_v23, 0.0  ;;  %v591_v36 = vadd.f32 %v1628_v49, %v2022_v63 }
  0xf4   : > { %v527_v35 = vadd.f32 %v1612_v32, %v2022_v63  ;;  %1645 = vmatprep.mubr.msk.bf16.mxu1 %vm697_vm3, %v644_v30  ;;  %v618_v42 = vmax.f32 %v516_v34, 0.0  ;;  %v595_v14 = vpop.f32.mrf.mxu1  ;;  %v633_v30 = vmax.f32 %v575_v25, 0.0 }
  0xf5   : > { %v518_v37 = vpop.f32.mrf.mxu0  ;;  %1646 = vmatmul.mubr.msk.bf16.gmra.mxu1 %vm697_vm3, %v645_v31  ;;  %v654_v32 = vpack.c.bf16 %v635_v28, %v634_v27  ;;  %v596_v34 = vadd.f32 %v2022_v63, %v595_v14 }
  0xf6   : > { %v519_v38 = vadd.f32 %v2022_v63, %v518_v37  ;;  %v621_v39 = vmax.f32 %v527_v35, 0.0  ;;  %v1632_v26 = vpop.f32.mrf.mxu1  ;;  %v653_v35 = vpack.c.bf16 %v633_v30, %v632_v29 }
  0xf7   : > { %v1615_v40 = vpop.f32.mrf.mxu0  ;;  %v638_v37 = vmax.f32 %v596_v34, 0.0 }
  0xf8   : > { %v619_v43 = vmax.f32 %v519_v38, 0.0  ;;  %v647_v47 = vpack.c.bf16 %v621_v39, %v620_v44  ;;  %v540_v52 = vadd.f32 %v1615_v40, %v2022_v63  ;;  %v598_v31 = vpop.f32.mrf.mxu1  ;;  %v636_v39 = vmax.f32 %v588_v17, 0.0 }
  0xf9   : > { %v531_v45 = vpop.f32.mrf.mxu0  ;;  %v599_v6 = vadd.f32 %v2022_v63, %v598_v31  ;;  %v637_v40 = vmax.f32 %v591_v36, 0.0  ;;  %v607_v44 = vadd.f32 %v1632_v26, %v2022_v63 }
  0xfa   : > { %v646_v46 = vpack.c.bf16 %v619_v43, %v618_v42  ;;  %v532_v50 = vadd.f32 %v2022_v63, %v531_v45  ;;  %v624_v60 = vmax.f32 %v540_v52, 0.0  ;;  %v604_v43 = vadd.f32 %v1631_v4, %v2022_v63 }
  0xfb   : > { %v1616_v48 = vpop.f32.mrf.mxu0  ;;  %v639_v38 = vmax.f32 %v599_v6, 0.0  ;;  %v655_v42 = vpack.c.bf16 %v637_v40, %v636_v39  ;;  %v641_v45 = vmax.f32 %v607_v44, 0.0 }
  0xfc   : > { %v543_v51 = vadd.f32 %v1616_v48, %v2022_v63  ;;  %1649 = vmatprep.mubr.msk.bf16.mxu1 %vm697_vm3, %v646_v46  ;;  %v622_v58 = vmax.f32 %v532_v50, 0.0  ;;  %v640_v33 = vmax.f32 %v604_v43, 0.0 }
  0xfd   : > { %v534_v53 = vpop.f32.mrf.mxu0  ;;  %1650 = vmatmul.mubr.msk.bf16.gmra.mxu1 %vm697_vm3, %v647_v47  ;;  %v656_v41 = vpack.c.bf16 %v639_v38, %v638_v37  ;;  %v1773_v47 = vld [vmem:[%s2274_s5] sm:$0xff]  }
  0xfe   : > { %v535_v54 = vadd.f32 %v2022_v63, %v534_v53  ;;  %v625_v55 = vmax.f32 %v543_v51, 0.0  ;;  %v657_v46 = vpack.c.bf16 %v641_v45, %v640_v33  ;;  %1679 = vmatprep.subr.bf16.mxu0 %v1773_v47 }
  0xff   : > { %v1619_v56 = vpop.f32.mrf.mxu0  ;;  %1680 = vmatpush3.bf16.msra.mxu0 %v1773_v47 }
 0x100   : > { %v623_v59 = vmax.f32 %v535_v54, 0.0  ;;  %v649_v2 = vpack.c.bf16 %v625_v55, %v624_v60  ;;  %v556_v8 = vadd.f32 %v1619_v56, %v2022_v63 }
 0x101   : > { %v547_v61 = vpop.f32.mrf.mxu0 }
 0x102   : > { %v648_v62 = vpack.c.bf16 %v623_v59, %v622_v58  ;;  %v548_v5 = vadd.f32 %v2022_v63, %v547_v61  ;;  %v628_v18 = vmax.f32 %v556_v8, 0.0 }
 0x103   : > { %v1620_v3 = vpop.f32.mrf.mxu0 }
 0x104   : > { %v559_v7 = vadd.f32 %v1620_v3, %v2022_v63  ;;  %1653 = vmatprep.mubr.msk.bf16.mxu1 %vm697_vm3, %v648_v62  ;;  %v626_v15 = vmax.f32 %v548_v5, 0.0 }
 0x105   : > { %v550_v9 = vpop.f32.mrf.mxu0  ;;  %1654 = vmatmul.mubr.msk.bf16.gmra.mxu1 %vm697_vm3, %v649_v2 }
 0x106   : > { %v551_v12 = vadd.f32 %v2022_v63, %v550_v9  ;;  %v629_v13 = vmax.f32 %v559_v7, 0.0  ;;  %v2087_v63 = vld [vmem:[%s2273_s4] ss:$0 sm:$0xff] }
 0x108   : > { %v627_v16 = vmax.f32 %v551_v12, 0.0  ;;  %v651_v24 = vpack.c.bf16 %v629_v13, %v628_v18 }
 0x10a   : > { %v650_v19 = vpack.c.bf16 %v627_v16, %v626_v15 }
 0x10c   : > { %1657 = vmatprep.mubr.msk.bf16.mxu1 %vm697_vm3, %v650_v19 }
 0x10d   : > { %1658 = vmatmul.mubr.msk.bf16.gmra.mxu1 %vm697_vm3, %v651_v24 }
 0x10e   : > { %1661 = vmatprep.mubr.msk.bf16.mxu1 %vm697_vm3, %v652_v20 }
 0x115   : > { %1662 = vmatmul.mubr.msk.bf16.gmra.mxu1 %vm697_vm3, %v653_v35 }
 0x116   : > { %1665 = vmatprep.mubr.msk.bf16.mxu1 %vm697_vm3, %v654_v32 }
 0x11d   : > { %1666 = vmatmul.mubr.msk.bf16.gmra.mxu1 %vm697_vm3, %v655_v42 }
 0x11e   : > { %1669 = vmatprep.mubr.msk.bf16.mxu1 %vm697_vm3, %v656_v41 }
 0x125   : > { %1670 = vmatmul.mubr.msk.bf16.gmra.mxu1 %vm697_vm3, %v657_v46 }
 0x1ad   : > { %v1643_v48 = vpop.f32.mrf.mxu1 }
 0x1ae   : > { %v789_v53 = vadd.f32 %v1643_v48, %v2087_v63 }
 0x1af   : > { %v780_v49 = vpop.f32.mrf.mxu1 }
 0x1b0   : > { %v781_v51 = vadd.f32 %v2087_v63, %v780_v49  ;;  %v909_v60 = vmax.f32 %v789_v53, 0.0 }
 0x1b1   : > { %v1644_v50 = vpop.f32.mrf.mxu1 }
 0x1b2   : > { %v792_v52 = vadd.f32 %v1644_v50, %v2087_v63  ;;  %v907_v58 = vmax.f32 %v781_v51, 0.0 }
 0x1b3   : > { %v783_v54 = vpop.f32.mrf.mxu1 }
 0x1b4   : > { %v784_v55 = vadd.f32 %v2087_v63, %v783_v54  ;;  %v910_v56 = vmax.f32 %v792_v52, 0.0 }
 0x1b5   : > { %v1647_v57 = vpop.f32.mrf.mxu1 }
 0x1b6   : > { %v908_v59 = vmax.f32 %v784_v55, 0.0  ;;  %v940_v0 = vpack.c.bf16 %v910_v56, %v909_v60  ;;  %v805_v4 = vadd.f32 %v1647_v57, %v2087_v63 }
 0x1b7   : > { %v796_v61 = vpop.f32.mrf.mxu1 }
 0x1b8   : > { %v939_v62 = vpack.c.bf16 %v908_v59, %v907_v58  ;;  %v797_v2 = vadd.f32 %v2087_v63, %v796_v61  ;;  %v913_v11 = vmax.f32 %v805_v4, 0.0 }
 0x1b9   : > { %v1648_v1 = vpop.f32.mrf.mxu1 }
 0x1ba   : > { %v808_v3 = vadd.f32 %v1648_v1, %v2087_v63  ;;  %1681 = vmatprep.mubr.msk.bf16.mxu0 %vm697_vm3, %v939_v62  ;;  %v911_v10 = vmax.f32 %v797_v2, 0.0 }
 0x1bb   : > { %v799_v5 = vpop.f32.mrf.mxu1  ;;  %1682 = vmatmul.mubr.msk.bf16.vlgmr.msra.gmra.mxu0 %vm697_vm3, %v940_v0 }
 0x1bc   : > { %v800_v7 = vadd.f32 %v2087_v63, %v799_v5  ;;  %v914_v8 = vmax.f32 %v808_v3, 0.0 }
 0x1bd   : > { %v1651_v9 = vpop.f32.mrf.mxu1 }
 0x1be   : > { %v912_v12 = vmax.f32 %v800_v7, 0.0  ;;  %v942_v15 = vpack.c.bf16 %v914_v8, %v913_v11  ;;  %v821_v20 = vadd.f32 %v1651_v9, %v2087_v63 }
 0x1bf   : > { %v812_v13 = vpop.f32.mrf.mxu1 }
 0x1c0   : > { %v941_v14 = vpack.c.bf16 %v912_v12, %v911_v10  ;;  %v813_v18 = vadd.f32 %v2087_v63, %v812_v13  ;;  %v917_v27 = vmax.f32 %v821_v20, 0.0 }
 0x1c1   : > { %v1652_v16 = vpop.f32.mrf.mxu1 }
 0x1c2   : > { %v824_v19 = vadd.f32 %v1652_v16, %v2087_v63  ;;  %1685 = vmatprep.mubr.msk.bf16.mxu0 %vm697_vm3, %v941_v14  ;;  %v915_v25 = vmax.f32 %v813_v18, 0.0 }
 0x1c3   : > { %v815_v21 = vpop.f32.mrf.mxu1  ;;  %1686 = vmatmul.mubr.msk.bf16.gmra.mxu0 %vm697_vm3, %v942_v15 }
 0x1c4   : > { %v816_v22 = vadd.f32 %v2087_v63, %v815_v21  ;;  %v918_v23 = vmax.f32 %v824_v19, 0.0 }
 0x1c5   : > { %v1655_v24 = vpop.f32.mrf.mxu1 }
 0x1c6   : > { %v916_v26 = vmax.f32 %v816_v22, 0.0  ;;  %v944_v30 = vpack.c.bf16 %v918_v23, %v917_v27  ;;  %v837_v6 = vadd.f32 %v1655_v24, %v2087_v63 }
 0x1c7   : > { %v828_v28 = vpop.f32.mrf.mxu1 }
 0x1c8   : > { %v943_v29 = vpack.c.bf16 %v916_v26, %v915_v25  ;;  %v829_v32 = vadd.f32 %v2087_v63, %v828_v28  ;;  %v921_v40 = vmax.f32 %v837_v6, 0.0 }
 0x1c9   : > { %v1656_v31 = vpop.f32.mrf.mxu1 }
 0x1ca   : > { %v840_v34 = vadd.f32 %v1656_v31, %v2087_v63  ;;  %1689 = vmatprep.mubr.msk.bf16.mxu0 %vm697_vm3, %v943_v29  ;;  %v919_v38 = vmax.f32 %v829_v32, 0.0 }
 0x1cb   : > { %v831_v35 = vpop.f32.mrf.mxu1  ;;  %1690 = vmatmul.mubr.msk.bf16.gmra.mxu0 %vm697_vm3, %v944_v30 }
 0x1cc   : > { %v832_v17 = vadd.f32 %v2087_v63, %v831_v35  ;;  %v922_v36 = vmax.f32 %v840_v34, 0.0 }
 0x1cd   : > { %v1659_v37 = vpop.f32.mrf.mxu1 }
 0x1ce   : > { %v920_v39 = vmax.f32 %v832_v17, 0.0  ;;  %v946_v43 = vpack.c.bf16 %v922_v36, %v921_v40  ;;  %v853_v46 = vadd.f32 %v1659_v37, %v2087_v63  ;;  %v2140_v17 = vld [vmem:[%s2276_s7] sm:$0x1] }
 0x1cf   : > { %v844_v41 = vpop.f32.mrf.mxu1  ;;  %1597 = vmatprep.mubr.msk.bf16.mxu1 %vm697_vm3, %v2140_v17 }
 0x1d0   : > { %v945_v42 = vpack.c.bf16 %v920_v39, %v919_v38  ;;  %v845_v33 = vadd.f32 %v2087_v63, %v844_v41  ;;  %v925_v53 = vmax.f32 %v853_v46, 0.0  ;;  %v1252_v39 = vld [vmem:[#allocation2] sm:$0x1]  ;;  %v1837_v41 = vmov 0  }
 0x1d1   : > { %v1660_v44 = vpop.f32.mrf.mxu1  ;;  %1765 = vset.pattern.permute.xlu0 %v1837_v41 }
 0x1d2   : > { %v856_v45 = vadd.f32 %v1660_v44, %v2087_v63  ;;  %1693 = vmatprep.mubr.msk.bf16.mxu0 %vm697_vm3, %v945_v42  ;;  %v923_v51 = vmax.f32 %v845_v33, 0.0  ;;  %1255 = vperm.xlu0 %1765, %v1252_v39  }
 0x1d3   : > { %v847_v47 = vpop.f32.mrf.mxu1  ;;  %1694 = vmatmul.mubr.msk.bf16.gmra.mxu0 %vm697_vm3, %v946_v43 }
 0x1d4   : > { %v848_v48 = vadd.f32 %v2087_v63, %v847_v47  ;;  %v926_v49 = vmax.f32 %v856_v45, 0.0 }
 0x1d5   : > { %v1663_v50 = vpop.f32.mrf.mxu1 }
 0x1d6   : > { %v924_v52 = vmax.f32 %v848_v48, 0.0  ;;  %v948_v56 = vpack.c.bf16 %v926_v49, %v925_v53  ;;  %v869_v60 = vadd.f32 %v1663_v50, %v2087_v63 }
 0x1d7   : > { %v860_v54 = vpop.f32.mrf.mxu1 }
 0x1d8   : > { %v947_v55 = vpack.c.bf16 %v924_v52, %v923_v51  ;;  %v861_v58 = vadd.f32 %v2087_v63, %v860_v54  ;;  %v929_v4 = vmax.f32 %v869_v60, 0.0 }
 0x1d9   : > { %v1664_v57 = vpop.f32.mrf.mxu1 }
 0x1da   : > { %v872_v59 = vadd.f32 %v1664_v57, %v2087_v63  ;;  %1697 = vmatprep.mubr.msk.bf16.mxu0 %vm697_vm3, %v947_v55  ;;  %v927_v2 = vmax.f32 %v861_v58, 0.0 }
 0x1db   : > { %v863_v61 = vpop.f32.mrf.mxu1  ;;  %1698 = vmatmul.mubr.msk.bf16.gmra.mxu0 %vm697_vm3, %v948_v56 }
 0x1dc   : > { %v864_v62 = vadd.f32 %v2087_v63, %v863_v61  ;;  %v930_v0 = vmax.f32 %v872_v59, 0.0 }
 0x1dd   : > { %v1667_v1 = vpop.f32.mrf.mxu1 }
 0x1de   : > { %v928_v3 = vmax.f32 %v864_v62, 0.0  ;;  %v950_v8 = vpack.c.bf16 %v930_v0, %v929_v4  ;;  %v885_v11 = vadd.f32 %v1667_v1, %v2087_v63 }
 0x1df   : > { %v876_v5 = vpop.f32.mrf.mxu1 }
 0x1e0   : > { %v949_v7 = vpack.c.bf16 %v928_v3, %v927_v2  ;;  %v877_v10 = vadd.f32 %v2087_v63, %v876_v5  ;;  %v933_v20 = vmax.f32 %v885_v11, 0.0 }
 0x1e1   : > { %v1668_v9 = vpop.f32.mrf.mxu1 }
 0x1e2   : > { %v888_v12 = vadd.f32 %v1668_v9, %v2087_v63  ;;  %1701 = vmatprep.mubr.msk.bf16.mxu0 %vm697_vm3, %v949_v7  ;;  %v931_v18 = vmax.f32 %v877_v10, 0.0 }
 0x1e3   : > { %v879_v13 = vpop.f32.mrf.mxu1  ;;  %1702 = vmatmul.mubr.msk.bf16.gmra.mxu0 %vm697_vm3, %v950_v8 }
 0x1e4   : > { %v880_v14 = vadd.f32 %v2087_v63, %v879_v13  ;;  %v934_v15 = vmax.f32 %v888_v12, 0.0 }
 0x1e5   : > { %v1671_v16 = vpop.f32.mrf.mxu1 }
 0x1e6   : > { %v932_v19 = vmax.f32 %v880_v14, 0.0  ;;  %v952_v23 = vpack.c.bf16 %v934_v15, %v933_v20  ;;  %v901_v27 = vadd.f32 %v1671_v16, %v2087_v63 }
 0x1e7   : > { %v892_v21 = vpop.f32.mrf.mxu1 }
 0x1e8   : > { %v951_v22 = vpack.c.bf16 %v932_v19, %v931_v18  ;;  %v893_v25 = vadd.f32 %v2087_v63, %v892_v21  ;;  %v937_v34 = vmax.f32 %v901_v27, 0.0 }
 0x1e9   : > { %v1672_v24 = vpop.f32.mrf.mxu1 }
 0x1ea   : > { %v904_v26 = vadd.f32 %v1672_v24, %v2087_v63  ;;  %1705 = vmatprep.mubr.msk.bf16.mxu0 %vm697_vm3, %v951_v22  ;;  %v935_v31 = vmax.f32 %v893_v25, 0.0 }
 0x1eb   : > { %v895_v28 = vpop.f32.mrf.mxu1  ;;  %1706 = vmatmul.mubr.msk.bf16.gmra.mxu0 %vm697_vm3, %v952_v23 }
 0x1ec   : > { %v896_v29 = vadd.f32 %v2087_v63, %v895_v28  ;;  %v938_v30 = vmax.f32 %v904_v26, 0.0  ;;  %v2147_v63 = vld [vmem:[%s2275_s6] ss:$0 sm:$0xff] }
 0x1ee   : > { %v936_v32 = vmax.f32 %v896_v29, 0.0  ;;  %v954_v35 = vpack.c.bf16 %v938_v30, %v937_v34 }
 0x1f0   : > { %v953_v6 = vpack.c.bf16 %v936_v32, %v935_v31 }
 0x1f2   : > { %1709 = vmatprep.mubr.msk.bf16.mxu0 %vm697_vm3, %v953_v6 }
 0x1f3   : > { %1710 = vmatmul.mubr.msk.bf16.gmra.mxu0 %vm697_vm3, %v954_v35 }
 0x27b   : > { %v1683_v36 = vpop.f32.mrf.mxu0 }
 0x27c   : > { %v1085_v38 = vadd.f32 %v1683_v36, %v2147_v63 }
 0x27d   : > { %v1076_v37 = vpop.f32.mrf.mxu0 }
 0x27e   : > { %v1077_v42 = vadd.f32 %v2147_v63, %v1076_v37  ;;  %v1205_v33 = vmax.f32 %v1085_v38, 0.0 }
 0x27f   : > { %v1684_v40 = vpop.f32.mrf.mxu0 }
 0x280   : > { %v1088_v43 = vadd.f32 %v1684_v40, %v2147_v63  ;;  %v1203_v48 = vmax.f32 %v1077_v42, 0.0 }
 0x281   : > { %v1079_v44 = vpop.f32.mrf.mxu0 }
 0x282   : > { %v1206_v45 = vmax.f32 %v1088_v43, 0.0  ;;  %v1080_v46 = vadd.f32 %v2147_v63, %v1079_v44 }
 0x283   : > { %v1687_v47 = vpop.f32.mrf.mxu0 }
 0x284   : > { %v2153_v49 = vpack.c.bf16 %v1206_v45, %v1205_v33  ;;  %v1204_v50 = vmax.f32 %v1080_v46, 0.0  ;;  %v1101_v53 = vadd.f32 %v1687_v47, %v2147_v63 }
 0x285   : > { %v1092_v51 = vpop.f32.mrf.mxu0 }
 0x286   : > { %v2155_v52 = vpack.c.bf16 %v1204_v50, %v1203_v48  ;;  %v1093_v55 = vadd.f32 %v2147_v63, %v1092_v51  ;;  %v1209_v58 = vmax.f32 %v1101_v53, 0.0 }
 0x287   : > { %v1688_v54 = vpop.f32.mrf.mxu0 }
 0x288   : > { %v1104_v56 = vadd.f32 %v1688_v54, %v2147_v63  ;;  %v1207_v62 = vmax.f32 %v1093_v55, 0.0 }
 0x289   : > { %v1095_v57 = vpop.f32.mrf.mxu0 }
 0x28a   : > { %v1210_v59 = vmax.f32 %v1104_v56, 0.0  ;;  %v1096_v60 = vadd.f32 %v2147_v63, %v1095_v57 }
 0x28b   : > { %v2161_v61 = vpop.f32.mrf.mxu0 }
 0x28c   : > { %v2163_v0 = vpack.c.bf16 %v1210_v59, %v1209_v58  ;;  %v1208_v1 = vmax.f32 %v1096_v60, 0.0 }
 0x28d   : > { %v2165_v2 = vpop.f32.mrf.mxu0 }
 0x28e   : > { %v2167_v3 = vpack.c.bf16 %v1208_v1, %v1207_v62 }
 0x28f   : > { %v1692_v4 = vpop.f32.mrf.mxu0 }
 0x290   : > { %v1120_v62 = vadd.f32 %v1692_v4, %v2147_v63 }
 0x291   : > { %v2169_v5 = vpop.f32.mrf.mxu0 }
 0x292   : > { %v1112_v4 = vadd.f32 %v2147_v63, %v2169_v5 }
 0x293   : > { %v1695_v7 = vpop.f32.mrf.mxu0 }
 0x294   : > { %v1133_v36 = vadd.f32 %v1695_v7, %v2147_v63 }
 0x295   : > { %v1124_v8 = vpop.f32.mrf.mxu0 }
 0x296   : > { %v1217_v41 = vmax.f32 %v1133_v36, 0.0  ;;  %v1125_v50 = vadd.f32 %v2147_v63, %v1124_v8  ;;  %v1117_v8 = vadd.f32 %v2161_v61, %v2147_v63  ;;  %v1109_v61 = vadd.f32 %v2147_v63, %v2165_v2 }
 0x297   : > { %v1696_v9 = vpop.f32.mrf.mxu0 }
 0x298   : > { %v1136_v6 = vadd.f32 %v1696_v9, %v2147_v63  ;;  %v1215_v59 = vmax.f32 %v1125_v50, 0.0 }
 0x299   : > { %v1127_v10 = vpop.f32.mrf.mxu0 }
 0x29a   : > { %v1218_v38 = vmax.f32 %v1136_v6, 0.0  ;;  %v1128_v44 = vadd.f32 %v2147_v63, %v1127_v10  ;;  %v1214_v10 = vmax.f32 %v1120_v62, 0.0 }
 0x29b   : > { %v1699_v12 = vpop.f32.mrf.mxu0 }
 0x29c   : > { %v1149_v13 = vadd.f32 %v1699_v12, %v2147_v63  ;;  %v1243_v45 = vpack.c.bf16 %v1218_v38, %v1217_v41  ;;  %v1216_v55 = vmax.f32 %v1128_v44, 0.0  ;;  %v1275_v38 = vsel %vm697_vm3, %v2163_v0, 0 }
 0x29d   : > { %v1140_v11 = vpop.f32.mrf.mxu0  ;;  %v1266_v0 = vsel %vm697_vm3, %v2155_v52, 0 }
 0x29e   : > { %v1141_v15 = vadd.f32 %v2147_v63, %v1140_v11  ;;  %v1221_v19 = vmax.f32 %v1149_v13, 0.0  ;;  %v1287_v58 = vsel %vm697_vm3, %v1243_v45, 0  ;;  %v1242_v1 = vpack.c.bf16 %v1216_v55, %v1215_v59 }
 0x29f   : > { %v1700_v14 = vpop.f32.mrf.mxu0 }
 0x2a0   : > { %v1152_v16 = vadd.f32 %v1700_v14, %v2147_v63  ;;  %v1219_v23 = vmax.f32 %v1141_v15, 0.0  ;;  %v1284_v13 = vsel %vm697_vm3, %v1242_v1, 0  ;;  %v1213_v14 = vmax.f32 %v1117_v8, 0.0 }
 0x2a1   : > { %v1143_v18 = vpop.f32.mrf.mxu0 }
 0x2a2   : > { %v1222_v20 = vmax.f32 %v1152_v16, 0.0  ;;  %v1144_v21 = vadd.f32 %v2147_v63, %v1143_v18  ;;  %v1241_v16 = vpack.c.bf16 %v1214_v10, %v1213_v14 }
 0x2a3   : > { %v2175_v22 = vpop.f32.mrf.mxu0 }
 0x2a4   : > { %v2177_v24 = vpack.c.bf16 %v1222_v20, %v1221_v19  ;;  %v1220_v25 = vmax.f32 %v1144_v21, 0.0  ;;  %v1212_v20 = vmax.f32 %v1112_v4, 0.0 }
 0x2a5   : > { %v2179_v26 = vpop.f32.mrf.mxu0 }
 0x2a6   : > { %v2181_v27 = vpack.c.bf16 %v1220_v25, %v1219_v23  ;;  %v1281_v25 = vsel %vm697_vm3, %v1241_v16, 0 }
 0x2a7   : > { %v1704_v28 = vpop.f32.mrf.mxu0 }
 0x2a8   : > { %v1168_v21 = vadd.f32 %v1704_v28, %v2147_v63  ;;  %v1157_v28 = vadd.f32 %v2147_v63, %v2179_v26  ;;  %v1258_v26 = vlaneseq }
 0x2a9   : > { %v2183_v29 = vpop.f32.mrf.mxu0 }
 0x2aa   : > { %v1226_v5 = vmax.f32 %v1168_v21, 0.0  ;;  %v1160_v2 = vadd.f32 %v2147_v63, %v2183_v29  ;;  %v1272_v29 = vsel %vm697_vm3, %v2167_v3, 0  ;;  %v1259_v3 = vshrl.u32 %v1258_v26, 7 }
 0x2ab   : > { %v1707_v30 = vpop.f32.mrf.mxu0  ;;  %vm1374_vm4 = vcmp.lt.s32.totalorder %v1258_v26, 256 }
 0x2ac   : > { %v1181_v60 = vadd.f32 %v1707_v30, %v2147_v63  ;;  %v1211_v30 = vmax.f32 %v1109_v61, 0.0  ;;  %v1224_v36 = vmax.f32 %v1160_v2, 0.0 }
 0x2ad   : > { %v1172_v31 = vpop.f32.mrf.mxu0 }
 0x2ae   : > { %v1229_v9 = vmax.f32 %v1181_v60, 0.0  ;;  %v1173_v15 = vadd.f32 %v2147_v63, %v1172_v31  ;;  %v1165_v31 = vadd.f32 %v2175_v22, %v2147_v63 }
 0x2af   : > { %v1708_v32 = vpop.f32.mrf.mxu0 }
 0x2b0   : > { %v1184_v56 = vadd.f32 %v1708_v32, %v2147_v63  ;;  %v1227_v19 = vmax.f32 %v1173_v15, 0.0  ;;  %v1240_v32 = vpack.c.bf16 %v1212_v20, %v1211_v30 }
 0x2b1   : > { %v1175_v34 = vpop.f32.mrf.mxu0 }
 0x2b2   : > { %v1230_v7 = vmax.f32 %v1184_v56, 0.0  ;;  %v1176_v11 = vadd.f32 %v2147_v63, %v1175_v34  ;;  %v1225_v34 = vmax.f32 %v1165_v31, 0.0 }
 0x2b3   : > { %v1711_v35 = vpop.f32.mrf.mxu0 }
 0x2b4   : > { %v1197_v39 = vadd.f32 %v1711_v35, %v2147_v63  ;;  %v1249_v12 = vpack.c.bf16 %v1230_v7, %v1229_v9  ;;  %v1228_v18 = vmax.f32 %v1176_v11, 0.0  ;;  %v1247_v6 = vpack.c.bf16 %v1226_v5, %v1225_v34 }
 0x2b5   : > { %v1188_v37 = vpop.f32.mrf.mxu0  ;;  %v1278_v35 = vsel %vm697_vm3, %v1240_v32, 0 }
 0x2b6   : > { %v1189_v42 = vadd.f32 %v2147_v63, %v1188_v37  ;;  %v1233_v46 = vmax.f32 %v1197_v39, 0.0  ;;  %v1248_v23 = vpack.c.bf16 %v1228_v18, %v1227_v19  ;;  %v1223_v37 = vmax.f32 %v1157_v28, 0.0 }
 0x2b7   : > { %v1712_v40 = vpop.f32.mrf.mxu0  ;;  %v1260_v39 = vsub.s32 0, %v1259_v3 }
 0x2b8   : > { %v1200_v43 = vadd.f32 %v1712_v40, %v2147_v63  ;;  %v1231_v51 = vmax.f32 %v1189_v42, 0.0  ;;  %v1246_v22 = vpack.c.bf16 %v1224_v36, %v1223_v37  ;;  %v1838_v40 = vmov 1966171168  }
 0x2b9   : > { %v1191_v33 = vpop.f32.mrf.mxu0  ;;  %v1358_v41 = vunpack.c.l.s4 %v1838_v40 }
 0x2ba   : > { %v1234_v47 = vmax.f32 %v1200_v43, 0.0  ;;  %v1192_v48 = vadd.f32 %v2147_v63, %v1191_v33  ;;  %v1269_v63 = vsel %vm697_vm3, %v2153_v49, 0 }
 0x2bb   : > { %v1359_v49 = vunpack.c.0.s8 %v1358_v41 }
 0x2bc   : > { %v1251_v53 = vpack.c.bf16 %v1234_v47, %v1233_v46  ;;  %v1232_v54 = vmax.f32 %v1192_v48, 0.0 }
 0x2bd   : > { %v1362_v52 = vsub.s32 %v1359_v49, %v1259_v3 }
 0x2be   : > { %v1250_v57 = vpack.c.bf16 %v1232_v54, %v1231_v51  ;;  %1715 = vmatprep.subr.msk.bf16.mxu1 %vm697_vm3, %v1251_v53 }
 0x2bf   : > { %1582 = vmatpush3.bf16.xpose.msra.mxu1 %v1287_v58 }
 0x2c0   : > { %1716 = vmatprep.subr.msk.bf16.mxu1 %vm697_vm3, %v1250_v57 }
 0x2c7   : > { %1584 = vmatpush3.bf16.xpose.msra.mxu1 %v1284_v13 }
 0x2c8   : > { %1717 = vmatprep.subr.msk.bf16.mxu1 %vm697_vm3, %v1249_v12 }
 0x2cf   : > { %1586 = vmatpush3.bf16.xpose.msra.mxu1 %v1281_v25 }
 0x2d0   : > { %1718 = vmatprep.subr.msk.bf16.mxu1 %vm697_vm3, %v1248_v23 }
 0x2d7   : > { %1588 = vmatpush3.bf16.xpose.msra.mxu1 %v1278_v35 }
 0x2d8   : > { %1719 = vmatprep.subr.msk.bf16.mxu1 %vm697_vm3, %v1247_v6 }
 0x2df   : > { %1590 = vmatpush3.bf16.xpose.msra.mxu1 %v1275_v38 }
 0x2e0   : > { %1720 = vmatprep.subr.msk.bf16.mxu1 %vm697_vm3, %v1246_v22 }
 0x2e7   : > { %1592 = vmatpush3.bf16.xpose.msra.mxu1 %v1272_v29 }
 0x2e8   : > { %1721 = vmatprep.subr.msk.bf16.mxu1 %vm697_vm3, %v2177_v24  ;;  %v1256_v24 = vpop.permute.xlu0 %1255 }
 0x2e9   : > { %v1261_v42 = vrot.slane %v1256_v24, %v1260_v39 }
 0x2ef   : > { %1594 = vmatpush3.bf16.xpose.msra.mxu1 %v1269_v63 }
 0x2f0   : > { %1722 = vmatprep.subr.msk.bf16.mxu1 %vm697_vm3, %v2181_v27 }
 0x2f7   : > { %1596 = vmatpush3.bf16.xpose.msra.mxu1 %v1266_v0 }
 0x2fe   : > { %1598 = vmatmul.mubr.msk.bf16.vlgmr.msra.gmra.mxu1 %vm697_vm3, %v2140_v17 }
 0x3be   : > { %v1347_v43 = vpop.f32.mrf.mxu1 }
 0x3bf   : > { %v1348_v44 = vadd.f32 %v1347_v43, %v1261_v42 }
 0x3c0   : > { %v1349_v27 = vpop.f32.mrf.mxu1 }
 0x3c1   : > { %v1350_v33 = vadd.f32 %v1349_v27, %v1261_v42 }
 0x3c2   : > { %v1351_v45 = vpop.f32.mrf.mxu1 }
 0x3c3   : > { %v1356_v46 = vcombine.low %v1348_v44, %v1350_v33 }
 0x3c4   : > { %v1352_v17 = vpop.f32.mrf.mxu1 }
 0x3c5   : > { %v1363_v47 = vrot.slane %v1356_v46, %v1362_v52 }
 0x3c7   : > { %v1370_v48 = vrot.slane %v1363_v47, %v1362_v52 }
 0x3c9   : > { %1376 = vst.msk [vmem:[%s328_s30] sm:$0x3] %vm1374_vm4, %v1370_v48 }
 0x3ca   : > { %1787 = shalt.err (!%p1784_p3)
}
 0x3cb   : > { %s1788_s27 = scalar_lea.hbm %s1390_s17, 32  ;;  %s1792_s29 = scalar_lea.hbm %s2278_s9, 64 }
 0x3cc   : > { %p1789_p4 = scmp.ne.s32.totalorder %s1390_s17, %s1788_s27  ;;  %p1793_p9 = scmp.lt.s32.totalorder %s1390_s17, %s2278_s9 }
 0x3cd   : > { %p1794_p10 = scmp.lt.s32.totalorder %s1792_s29, %s1788_s27 }
 0x3ce   : > { %p1790_p7 = pnand %p1789_p4, %p1928_p5 }
 0x3cf   : > { %p1795_p11 = por %p1794_p10, %p1793_p9 }
 0x3d0   : > { %p1791_p8 = pneg %p1790_p7 }
 0x3d2   : > { %p1796_p12 = pnand %p1795_p11, %p1791_p8 }
 0x3d4   : > { %1799 = shalt.err (!%p1796_p12)
}
 0x3d5   : > { %1723 = dma.vmem_to_hbm [thread:$0]  (%p1928_p5), %s1393_s10, 32, %s1390_s17, %s1378_s18  }
 0x3d6 PF: > { %p1729_p13 = scmp.ge.s32.totalorder %s1834_s14, 2  ;;  %s1404_s15 = sand.u32 1, %s1822_s11  }
 0x3d7   : > { %s1405_s22 = scalar_lea.sflag [#allocation4], %s1404_s15 }
 0x3d8   : > { %p1726_p0 = pnand %p1729_p13, %p1932_p6 }
 0x3da   : > { %p1727_p1 = pneg %p1726_p0 }
 0x3dc   : > { %1817 = dma.done.wait (%p1727_p1), %s1405_s22, 32  }
 0x3dd   : > { %1819 = vsyncadd (%p1727_p1), %s1405_s22, 4294967264  ;;  %p21_p2 = scmp.ge.s32.totalorder %s1916_s16, 4   ;;  %s2281_s11 = smov %s1826_s12 }
 0x3de   : > { %s2282_s12 = smov %s1830_s13  ;;  %s2283_s13 = smov %s1926_s19 }
 0x3df   : > { %s2284_s14 = smov %s1916_s16  ;;  %23 = sbr.rel (!%p21_p2) target bundleno = 6 (0x6), region = 91 }
 0x3e4   :  { %1410 = vsyncpa [#allocation4], 1 }
 0x3e5   :  { %1412 = vsyncpa [#allocation4 + $0x1], 1 }

</bundles_post_ra>
